<compile_context>
chip_gen: v7x
topology: tpu7x:2x2x1
jax: 0.10.0
libtpu: 0.0.40
codegen_flags: <defaults>
</compile_context>

<pallas_src>
import jax
import jax.numpy as jnp
import numpy as np
from jax.experimental import pallas as pl
from jax.experimental.pallas import tpu as pltpu


def _make_conv_kernel(K, padding, T_out):
    """Kernel for one group: (B, C_in, T) x (C_out, K*C_in) -> (B, C_out, T_out)."""

    def kernel(x_ref, w_ref, o_ref):
        x = x_ref[...]                                    # (B, C_in, T)
        B = x.shape[0]
        if padding:
            # Zero-pad in time inside the kernel (VMEM values only, no HBM pass).
            z = jnp.zeros(x.shape[:-1] + (padding,), x.dtype)
            x = jnp.concatenate([z, x, z], axis=-1)       # (B, C_in, T + 2*pad)

        # im2col: fold the K taps into the contraction axis.
        # cols[b, k*C_in + c, t] = x_padded[b, c, t + k]
        cols = jnp.concatenate([x[:, :, k:k + T_out] for k in range(K)], axis=1)

        w = w_ref[...]                                    # (C_out, K*C_in)
        # One MXU matmul per batch element, contraction = K*C_in, f32 accumulate.
        for b in range(B):                                # B is a small static constant
            o_ref[b] = jnp.dot(w, cols[b],
                               preferred_element_type=jnp.float32).astype(o_ref.dtype)

    return kernel


def conv1d_generated_pallas(instrument, x, W_bneck, b_bneck, W_kern, b_kern,
                            *, out_channels, kernel_size,
                            stride=1, padding=0, dilation=1, groups=1):
    """Forward pass of Conv1dGenerated.

    instrument: (4, E1), x: (B, 4, C_in, T)  ->  (B, 4, C_out, T_out)
    """
    # TODO(synk): only the module's default stride/dilation/groups/bias=False are supported.
    assert stride == 1 and dilation == 1 and groups == 1
    B, four, C_in, T = x.shape
    assert four == 4
    C_out, K = out_channels, kernel_size

    # --- glue: generate the per-group conv kernels from the instrument embedding ---
    emb = instrument @ W_bneck.T + b_bneck                  # (4, E2)
    w = emb @ W_kern.T + b_kern                             # (4, C_out*C_in*K)
    # Same memory order as torch .view(4*C_out, C_in, K), then reorder the
    # contraction to (k, c_in) so it matches the in-kernel im2col layout.
    w = (w.reshape(4, C_out, C_in, K)
          .transpose(0, 1, 3, 2)                            # (4, C_out, K, C_in)
          .reshape(4, C_out, K * C_in)
          .astype(x.dtype))

    T_out = T + 2 * padding - K + 1

    kernel = _make_conv_kernel(K, padding, T_out)

    out = pl.pallas_call(
        kernel,
        out_shape=jax.ShapeDtypeStruct((B, 4, C_out, T_out), x.dtype),
        grid_spec=pl.GridSpec(
            grid=(4,),
            in_specs=[
                # x in native layout: per group, take the whole (B, C_in, T) slab.
                pl.BlockSpec((B, pl.Squeezed(), C_in, T),
                             lambda g: (0, g, 0, 0)),
                # tiny generated weight for this group, DMA'd once per step.
                pl.BlockSpec((pl.Squeezed(), C_out, K * C_in),
                             lambda g: (g, 0, 0)),
            ],
            out_specs=pl.BlockSpec((B, pl.Squeezed(), C_out, T_out),
                                   lambda g: (0, g, 0, 0)),
        ),
        compiler_params=pltpu.CompilerParams(
            dimension_semantics=("parallel",)),
    )(x, w)

    return out                                              # (B, 4, C_out, T_out)


if __name__ == "__main__":
    # Small, deterministic configuration.
    E1, E2 = 8, 5
    C_in, C_out, K = 4, 6, 3
    B, T = 2, 16

    key = jax.random.PRNGKey(0)
    k1, k2, k3, k4, k5, k6 = jax.random.split(key, 6)

    # Deterministic "Linear" parameters (PyTorch Linear stores weight as (out, in)).
    W_bneck = jax.random.normal(k1, (E2, E1), jnp.float32) * 0.2
    b_bneck = jax.random.normal(k2, (E2,), jnp.float32) * 0.1
    W_kern = jax.random.normal(k3, (C_out * C_in * K, E2), jnp.float32) * 0.2
    b_kern = jax.random.normal(k4, (C_out * C_in * K,), jnp.float32) * 0.1

    instrument = jax.random.normal(k5, (4, E1), jnp.float32)
    x = jax.random.normal(k6, (B, 4, C_in, T), jnp.float32)

    out = conv1d_generated_pallas(instrument, x, W_bneck, b_bneck, W_kern, b_kern,
                                  out_channels=C_out, kernel_size=K)
    out = jax.block_until_ready(out)

    # Reference (mirrors F.conv1d(x.view(B, 4*C_in, T), kernel, groups=4)).
    emb_ref = instrument @ W_bneck.T + b_bneck
    w_ref = (emb_ref @ W_kern.T + b_kern).reshape(4 * C_out, C_in, K)
    x_flat = x.reshape(B, 4 * C_in, T)
    ref = jax.lax.conv_general_dilated(
        x_flat, w_ref, window_strides=(1,), padding="VALID",
        dimension_numbers=("NCH", "OIH", "NCH"), feature_group_count=4)
    ref = ref.reshape(B, 4, C_out, -1)

    np.testing.assert_allclose(np.asarray(out), np.asarray(ref),
                               rtol=2e-3, atol=2e-3)
    assert out.shape == (B, 4, C_out, T - K + 1)
    print("KERNEL_OK")
</pallas_src>

<mosaic_0001>
module attributes {stable_mosaic.version = 11 : i64} {
  func.func @kernel(%arg0: i32, %arg1: memref<2x1x4x16xf32, #tpu.memory_space<vmem>>, %arg2: memref<1x6x12xf32, #tpu.memory_space<vmem>>, %arg3: memref<2x1x6x14xf32, #tpu.memory_space<vmem>>) attributes {dimension_semantics = [#tpu.dimension_semantics<parallel>], iteration_bounds = array<i64: 4>, scalar_prefetch = 0 : i64, scratch_operands = 0 : i64, tpu.core_type = #tpu.core_type<tc>, window_params = [{transform_indices = @transform_0, window_bounds = array<i64: 2, 1, 4, 16>}, {transform_indices = @transform_1, window_bounds = array<i64: 1, 6, 12>}, {transform_indices = @transform_2, window_bounds = array<i64: 2, 1, 6, 14>}]} {
    %c0 = arith.constant 0 : index
    %c0_0 = arith.constant 0 : index
    %c0_1 = arith.constant 0 : index
    %c0_2 = arith.constant 0 : index
    %0 = vector.load %arg1[%c0, %c0_0, %c0_1, %c0_2] : memref<2x1x4x16xf32, #tpu.memory_space<vmem>>, vector<2x1x4x16xf32>
    %1 = vector.shape_cast %0 : vector<2x1x4x16xf32> to vector<2x4x16xf32>
    %2 = vector.extract_strided_slice %1 {offsets = [0, 0, 0], sizes = [2, 4, 14], strides = [1, 1, 1]} : vector<2x4x16xf32> to vector<2x4x14xf32>
    %3 = vector.extract_strided_slice %1 {offsets = [0, 0, 1], sizes = [2, 4, 14], strides = [1, 1, 1]} : vector<2x4x16xf32> to vector<2x4x14xf32>
    %4 = vector.extract_strided_slice %1 {offsets = [0, 0, 2], sizes = [2, 4, 14], strides = [1, 1, 1]} : vector<2x4x16xf32> to vector<2x4x14xf32>
    %5 = tpu.concatenate %2, %3, %4 in 1 : vector<2x4x14xf32>, vector<2x4x14xf32>, vector<2x4x14xf32> -> vector<2x12x14xf32>
    %c0_3 = arith.constant 0 : index
    %c0_4 = arith.constant 0 : index
    %c0_5 = arith.constant 0 : index
    %6 = vector.load %arg2[%c0_3, %c0_4, %c0_5] : memref<1x6x12xf32, #tpu.memory_space<vmem>>, vector<1x6x12xf32>
    %7 = vector.shape_cast %6 : vector<1x6x12xf32> to vector<6x12xf32>
    %8 = vector.extract_strided_slice %5 {offsets = [0, 0, 0], sizes = [1, 12, 14], strides = [1, 1, 1]} : vector<2x12x14xf32> to vector<1x12x14xf32>
    %9 = vector.shape_cast %8 : vector<1x12x14xf32> to vector<12x14xf32>
    %cst = arith.constant dense<0.000000e+00> : vector<6x14xf32>
    %10 = tpu.matmul %7, %9, %cst {dimension_numbers = #tpu.dot_dimension_numbers<[1], [0], [0], [1], [0, 0, 1, 1], [], []>} : vector<6x12xf32>, vector<12x14xf32>, vector<6x14xf32> -> vector<6x14xf32>
    %c0_6 = arith.constant 0 : index
    %c0_7 = arith.constant 0 : index
    %c0_8 = arith.constant 0 : index
    %c0_9 = arith.constant 0 : index
    %11 = vector.load %arg3[%c0_6, %c0_7, %c0_8, %c0_9] : memref<2x1x6x14xf32, #tpu.memory_space<vmem>>, vector<1x1x6x14xf32>
    %12 = vector.shape_cast %11 : vector<1x1x6x14xf32> to vector<6x14xf32>
    %13 = vector.shape_cast %10 : vector<6x14xf32> to vector<1x1x6x14xf32>
    tpu.vector_store %arg3[%c0_6, %c0_7, %c0_8, %c0_9], %13 {strides = array<i32>} : memref<2x1x6x14xf32, #tpu.memory_space<vmem>>, vector<1x1x6x14xf32>,
    %14 = vector.extract_strided_slice %5 {offsets = [1, 0, 0], sizes = [1, 12, 14], strides = [1, 1, 1]} : vector<2x12x14xf32> to vector<1x12x14xf32>
    %15 = vector.shape_cast %14 : vector<1x12x14xf32> to vector<12x14xf32>
    %cst_10 = arith.constant dense<0.000000e+00> : vector<6x14xf32>
    %16 = tpu.matmul %7, %15, %cst_10 {dimension_numbers = #tpu.dot_dimension_numbers<[1], [0], [0], [1], [0, 0, 1, 1], [], []>} : vector<6x12xf32>, vector<12x14xf32>, vector<6x14xf32> -> vector<6x14xf32>
    %c1 = arith.constant 1 : index
    %c0_11 = arith.constant 0 : index
    %c0_12 = arith.constant 0 : index
    %c0_13 = arith.constant 0 : index
    %17 = vector.load %arg3[%c1, %c0_11, %c0_12, %c0_13] : memref<2x1x6x14xf32, #tpu.memory_space<vmem>>, vector<1x1x6x14xf32>
    %18 = vector.shape_cast %17 : vector<1x1x6x14xf32> to vector<6x14xf32>
    %19 = vector.shape_cast %16 : vector<6x14xf32> to vector<1x1x6x14xf32>
    tpu.vector_store %arg3[%c1, %c0_11, %c0_12, %c0_13], %19 {strides = array<i32>} : memref<2x1x6x14xf32, #tpu.memory_space<vmem>>, vector<1x1x6x14xf32>,
    return
  }
  func.func @transform_0(%arg0: i32) -> (i32, i32, i32, i32) {
    %c0_i32 = arith.constant 0 : i32
    %c0_i32_0 = arith.constant 0 : i32
    %c0_i32_1 = arith.constant 0 : i32
    %c0_i32_2 = arith.constant 0 : i32
    return %c0_i32, %arg0, %c0_i32_0, %c0_i32_1 : i32, i32, i32, i32
  }
  func.func @transform_1(%arg0: i32) -> (i32, i32, i32) {
    %c0_i32 = arith.constant 0 : i32
    %c0_i32_0 = arith.constant 0 : i32
    %c0_i32_1 = arith.constant 0 : i32
    return %arg0, %c0_i32, %c0_i32_0 : i32, i32, i32
  }
  func.func @transform_2(%arg0: i32) -> (i32, i32, i32, i32) {
    %c0_i32 = arith.constant 0 : i32
    %c0_i32_0 = arith.constant 0 : i32
    %c0_i32_1 = arith.constant 0 : i32
    %c0_i32_2 = arith.constant 0 : i32
    return %c0_i32, %arg0, %c0_i32_0, %c0_i32_1 : i32, i32, i32, i32
  }
}

</mosaic_0001>

<bundles_post_ra>
// kernel: tpu_custom_call.1
= control target key start
LH: loop header
LB: loop body
LE: loop exit
PB: predicated region body
PF: predicated region fallthrough
CT: control target
= control target key end

     0   :  { %s617_s9 = smov 0   ;;  %s619_s10 = smov 0   ;;  %s676_s0 = inlined_call_operand.vmem [shape: f32[2,4,4,16], index: 0, kind: input, shape index: {}]   ;;  %s677_s1 = inlined_call_operand.vmem [shape: f32[4,6,12], index: 1, kind: input, shape index: {}]   ;;  %s678_s2 = inlined_call_operand.vmem [shape: f32[2,4,6,14], index: 2, kind: output, shape index: {}]  }
   0x1   :  { %s621_s11 = smov 0  }
   0x2 LB: > { %s630_s12 = sadd.s32 4294967295, %s594_s11   ;;  %s632_s13 = sadd.s32 1, %s594_s11   ;;  %s594_s11 = sphi %s621_s11, %s682_s11   ;;  %s590_s10 = sphi %s619_s10, %s681_s10   ;;  %s586_s9 = sphi %s617_s9, %s680_s9  }
   0x3   : > { %s16_s14 = ssub.s32 %s594_s11, %s632_s13  ;;  %s19_s15 = sadd.s32 1, %s590_s10 }
   0x4   : > { %p17_p0 = scmp.eq.s32.totalorder %s16_s14, 0  ;;  %p26_p1 = scmp.ne.s32.totalorder %s590_s10, %s586_s9 }
   0x5   : > { %p27_p2 = scmp.eq.s32.totalorder %s594_s11, 0  ;;  %p82_p3 = scmp.eq.s32.totalorder %s630_s12, 3 }
   0x6   : > { %s640_s16 = scalar_select %p17_p0, %s590_s10, %s19_s15  }
   0x7   : > { %p28_p4 = por %p27_p2, %p26_p1  ;;  %p642_p5 = por %p82_p3, %p26_p1 }
   0x8   : > { %p488_p6 = scmp.ge.s32.totalorder %s594_s11, 4 }
   0xa   : > { %104 = sbr.rel (%p488_p6) target bundleno = 24 (0x18), region = 16 }
  0x11   : > { %107 = sbr.rel (!%p28_p4) target bundleno = 24 (0x18), region = 20  ;;  %s109_s18 = sand.u32 (%p28_p4), 1, %s590_s10  }
  0x12   : > { %s490_s19 = sshll.u32 (%p28_p4), %s594_s11, 2  ;;  %s489_s20 = sshll.u32 (%p28_p4), %s109_s18, 3 }
  0x13   : > { %s113_s23 = scalar_lea.vmem (%p28_p4), %s676_s0, %s490_s19  ;;  %s111_s24 = scalar_lea.vmem (%p28_p4), [#allocation2], %s489_s20 }
  0x14   : > { %v129_v0 = vld [vmem:[%s113_s23] sm:$0xf] (%p28_p4)  ;;  %v131_v1 = vld [vmem:[%s113_s23 + $0x10] sm:$0xf] (%p28_p4) }
  0x15   : > { %130 = vst [vmem:[%s111_s24] sm:$0xf] (%p28_p4), %v129_v0  ;;  %132 = vst [vmem:[%s111_s24 + $0x4] sm:$0xf] (%p28_p4), %v131_v1 }
  0x18 PF: > { %p491_p7 = scmp.ge.s32.totalorder %s594_s11, 1  ;;  %p165_p8 = scmp.lt.s32.totalorder %s594_s11, 5 }
  0x1a   : > { %p166_p9 = pnand %p491_p7, %p165_p8 }
  0x1b   : > { %s172_s25 = sand.u32 (!%p166_p9), 1, %s586_s9   ;;  %v596_v2 = vmov (!%p166_p9), 0.0|0.0   ;;  %vm597_vm0 = vmmov (!%p166_p9), 0   ;;  %v598_v7 = vmov (!%p166_p9), 0.0   ;;  %s599_s28 = smov (!%p166_p9), 127   ;;  %vm216_vm1 = vcmask (!%p166_p9), 1043456  }
  0x1c   : > { %169 = sbr.rel (%p166_p9) target bundleno = 382 (0x17e), region = 65  ;;  %s492_s26 = sshll.u32 (!%p166_p9), %s172_s25, 3  ;;  %524 = vmatprep.subr.bf16.mxu0 (!%p166_p9), %v596_v2  ;;  %528 = vmatprep.subr.bf16.mxu1 (!%p166_p9), %v596_v2  ;;  %vm601_vm2 = vmmov (!%p166_p9), 1   ;;  %vm220_vm4 = vcmask (!%p166_p9), 97280   ;;  %vm296_vm5 = vcmask (!%p166_p9), 111616  }
  0x1d   : > { %s174_s27 = scalar_lea.vmem (!%p166_p9), [#allocation2], %s492_s26  ;;  %514 = vmatprep.mubr.msk.f32.mxu0 (!%p166_p9), %vm597_vm0, %v598_v7  ;;  %521 = vmatprep.mubr.msk.f32.mxu1 (!%p166_p9), %vm597_vm0, %v598_v7  ;;  %s600_s29 = smov (!%p166_p9), 126   ;;  %vm526_vm3 = vmpackc.low (!%p166_p9), %vm216_vm1, %vm601_vm2 }
  0x1e   : > { %v200_v3 = vld [vmem:[%s174_s27] sm:$0xf] (!%p166_p9)  ;;  %v201_v4 = vld [vmem:[%s174_s27 + $0x4] sm:$0xf] (!%p166_p9)  ;;  %p196_p10 = scmp.lt.s32.totalorder (!%p166_p9), %s630_s12, 3  ;;  %s493_s7 = sshll.u32 (!%p166_p9), %s172_s25, 4 }
  0x1f   : > { %v204_v5 = vrot.slane (!%p166_p9), %v200_v3, 4  ;;  %v205_v6 = vrot.slane (!%p166_p9), %v201_v4, 4  ;;  %v567_v9 = vpack.i.bf16 (!%p166_p9), %v201_v4, %v200_v3  ;;  %s195_s8 = scalar_lea.vmem (!%p166_p9), [#allocation3], %s493_s7 }
  0x21   : > { %v562_v8 = vpack.i.bf16 (!%p166_p9), %v205_v6, %v204_v5 }
  0x23   : > { %563 = vrot.lane.b32.xlu0 %v562_v8, %s599_s28  ;;  %s197_s30 = scalar_select %p196_p10, %s630_s12, 3 }
  0x24   : > { %s501_s11 = sshll.u32 (%p642_p5), %s630_s12, 3 }
  0x25   : > { %s494_s3 = sshll.u32 %s197_s30, 3  ;;  %s380_s9 = scalar_lea.vmem (%p642_p5), %s678_s2, %s501_s11 }
  0x26   : > { %s199_s6 = scalar_lea.vmem %s677_s1, %s494_s3 }
  0x27   : > { %568 = vrot.lane.b32.xlu0 %v567_v9, %s600_s29  ;;  %v219_v20 = vld [vmem:[%s199_s6] sm:$0x3f] }
  0x95   : > { %v564_v10 = vpop.permute.xlu0 %563 }
  0x96   : > { %v566_v11 = vunpack.i.h.bf16 %v564_v10  ;;  %v565_v12 = vunpack.i.l.bf16 %v564_v10 }
  0x98   : > { %v217_v16 = vsel %vm216_vm1, %v200_v3, %v565_v12  ;;  %v218_v17 = vsel %vm216_vm1, %v201_v4, %v566_v11 }
  0x99   : > { %v569_v13 = vpop.permute.xlu0 %568 }
  0x9a   : > { %v571_v14 = vunpack.i.h.bf16 %v569_v13  ;;  %v570_v15 = vunpack.i.l.bf16 %v569_v13 }
  0x9c   : > { %v525_v18 = vpack.c.bf16 %v570_v15, %v217_v16  ;;  %v529_v19 = vpack.c.bf16 %v571_v14, %v218_v17 }
  0x9e   : > { %527 = vmatpush3.bf16.msk.msra.mxu0 %vm526_vm3, %v525_v18  ;;  %531 = vmatpush3.bf16.msk.msra.mxu1 %vm526_vm3, %v529_v19 }
  0xa1   : > { %515 = vmatmul.mubr.msk.f32.vlgmr.msra.gmra.mrb[0].mxu0 %vm220_vm4, %v219_v20  ;;  %522 = vmatmul.mubr.msk.f32.vlgmr.msra.gmra.mrb[0].mxu1 %vm220_vm4, %v219_v20 }
 0x16f   : > { %378 = sbr.rel (!%p642_p5) target bundleno = 382 (0x17e), region = 73 }
 0x174   : > { %v292_v21 = vpop.f32.mrb[0].mxu0  ;;  %v366_v22 = vpop.f32.mrb[0].mxu1 }
 0x175   : > { %297 = vst.msk [vmem:[%s195_s8] sm:$0x3f] %vm296_vm5, %v292_v21  ;;  %499 = vst.msk [vmem:[%s195_s8 + $0x8] sm:$0x3f] %vm296_vm5, %v366_v22  ;;  %v516_v23 = vpop.f32.mrb[1].mxu0  ;;  %v523_v24 = vpop.f32.mrb[1].mxu1 }
 0x17c   : > { %v410_v25 = vld [vmem:[%s195_s8] sm:$0xff]  ;;  %v412_v26 = vld [vmem:[%s195_s8 + $0x8] sm:$0xff] }
 0x17d   : > { %411 = vst [vmem:[%s380_s9] sm:$0xff] %v410_v25  ;;  %413 = vst [vmem:[%s380_s9 + $0x20] sm:$0xff] %v412_v26 }
 0x17e PF: > { %p9_p11 = scmp.ge.s32.totalorder %s632_s13, 6   ;;  %s680_s9 = smov %s590_s10 }
 0x17f   : > { %s681_s10 = smov %s640_s16  ;;  %s682_s11 = smov %s632_s13 }
 0x180   :  { %11 = sbr.rel (!%p9_p11) target bundleno = 2 (0x2), region = 146 }

</bundles_post_ra>
